<compile_context>
chip_gen: v7x
topology: tpu7x:2x2x1
jax: 0.10.0
libtpu: 0.0.40
codegen_flags: <defaults>
</compile_context>

<pallas_src>
import math

import numpy as np
import jax
import jax.numpy as jnp
from jax.experimental import pallas as pl
from jax.experimental.pallas import tpu as pltpu


# ----------------------------------------------------------------------------
# Host-side (numpy) bicubic weight construction — compile-time constants.
# ----------------------------------------------------------------------------
_A = -0.75  # PyTorch bicubic kernel coefficient (align_corners=False).


def _cubic(d: float) -> float:
    d = abs(d)
    if d <= 1.0:
        return ((_A + 2.0) * d - (_A + 3.0)) * d * d + 1.0
    if d < 2.0:
        return ((_A * d - 5.0 * _A) * d + 8.0 * _A) * d - 4.0 * _A
    return 0.0


def _phase_table(scale: int) -> np.ndarray:
    """(scale, 5) tap weights over padded offsets 0..4 (PyTorch bicubic)."""
    w = np.zeros((scale, 5), np.float32)
    for p in range(scale):
        x = (p + 0.5) / scale - 0.5
        x0 = math.floor(x)           # -1 or 0
        t = x - x0
        base = x0 + 1                # 0 or 1
        for k in range(4):
            w[p, base + k] = _cubic(t + 1.0 - k)
    return w


def _tile_upsample_matrix(scale: int, ti: int) -> np.ndarray:
    """Banded (scale*ti, ti+4) matrix applying the 4-tap bicubic filter to a
    window of ti+4 edge-padded input rows. Identical for every row tile."""
    w = _phase_table(scale)
    p_mat = np.zeros((scale * ti, ti + 4), np.float32)
    for i in range(ti):
        p_mat[i * scale:(i + 1) * scale, i:i + 5] = w
    return p_mat


def _dense_upsample_matrix(in_size: int, scale: int) -> np.ndarray:
    """Full (out, in) matrix (reference only) with clamped taps."""
    out = np.zeros((in_size * scale, in_size), np.float32)
    for j in range(in_size * scale):
        x = (j + 0.5) / scale - 0.5
        x0 = math.floor(x)
        t = x - x0
        for k in range(4):
            idx = min(max(x0 - 1 + k, 0), in_size - 1)
            out[j, idx] += _cubic(t + 1.0 - k)
    return out


# ----------------------------------------------------------------------------
# Pallas kernel + wrapper.
# ----------------------------------------------------------------------------
def upsampling_forward(frame_features, slow_result, fast_result, params, *,
                       compute_dtype=jnp.float32, tq=None):
    # frame_features is unused by the PyTorch forward; kept for signature parity.
    del frame_features
    B, T_s, C_s = slow_result.shape
    _, T_f, C_f = fast_result.shape
    T_out = 4 * T_f
    assert 16 * T_s == T_out, "slow x16 and fast x4 must align for concat"
    F = params["w2s"].shape[1]

    # Output row tile; multiple of 16 so it maps to whole input rows of both
    # branches.  TODO(synk): use ~256 on v7x (64 MiB VMEM), ~512 on v5e/v6e.
    if tq is None:
        tq = min(T_out, 512)
    assert tq % 16 == 0 and T_out % tq == 0
    n_tiles = T_out // tq
    ti_f, ti_s = tq // 4, tq // 16

    cdt = jnp.dtype(compute_dtype)

    # Tile-invariant banded upsample matrices (host numpy constants).
    p_f = jnp.asarray(_tile_upsample_matrix(4, ti_f), dtype=cdt)
    p_s = jnp.asarray(_tile_upsample_matrix(16, ti_s), dtype=cdt)

    # Edge-clamp pad (2 rows each side) so clamped taps become plain slices.
    def pad(x):
        return jnp.concatenate([x[:, :1], x[:, :1], x, x[:, -1:], x[:, -1:]], axis=1)

    xf = pad(fast_result).astype(cdt)            # (B, T_f+4, C_f)
    xs = pad(slow_result).astype(cdt)            # (B, T_s+4, C_s)

    w1f = params["w1f"].astype(cdt)
    w1s = params["w1s"].astype(cdt)
    b1f = params["b1f"].astype(jnp.float32)
    b1s = params["b1s"].astype(jnp.float32)
    # Fused second stage: block-diagonal W2 expressed as two zero-padded
    # (C, 2F) halves -> no lane-axis concat inside the kernel.
    w2f = jnp.concatenate(
        [params["w2f"], jnp.zeros((C_f, F), params["w2f"].dtype)], axis=1).astype(cdt)
    w2s = jnp.concatenate(
        [jnp.zeros((C_s, F), params["w2s"].dtype), params["w2s"]], axis=1).astype(cdt)
    b2 = jnp.concatenate([params["b2f"], params["b2s"]], axis=1).astype(jnp.float32)

    def kernel(pf_ref, xf_ref, w1f_ref, b1f_ref, w2f_ref,
               ps_ref, xs_ref, w1s_ref, b1s_ref, w2s_ref, b2_ref, out_ref):
        q = pl.program_id(1)

        def branch(p_ref, x_ref, w1_ref, b1_ref, ti):
            # First Linear at T_in resolution (U@(X@W1) == (U@X)@W1).
            start = q * ti
            if ti % 8 == 0:
                start = pl.multiple_of(start, 8)
            xw = x_ref[pl.ds(start, ti + 4), :]                      # (ti+4, C)
            h1 = jnp.dot(xw, w1_ref[...], preferred_element_type=jnp.float32)
            # 4-tap bicubic upsample of this tile's window (tiny banded matmul).
            y = jnp.dot(p_ref[...], h1.astype(p_ref.dtype),
                        preferred_element_type=jnp.float32)          # (tq, C)
            return jnp.maximum(y + b1_ref[...], 0.0)                 # f32 epilogue

        hf = branch(pf_ref, xf_ref, w1f_ref, b1f_ref, ti_f)
        hs = branch(ps_ref, xs_ref, w1s_ref, b1s_ref, ti_s)

        # Fused second Linear of both branches + implicit concat: one (tq, 2F)
        # result stored contiguously to out_ref.
        out = (jnp.dot(hf.astype(w2f_ref.dtype), w2f_ref[...],
                       preferred_element_type=jnp.float32)
               + jnp.dot(hs.astype(w2s_ref.dtype), w2s_ref[...],
                         preferred_element_type=jnp.float32)
               + b2_ref[...])
        out_ref[...] = out.astype(out_ref.dtype)

    def const(shape):
        return pl.BlockSpec(shape, lambda b, t, _s=len(shape): (0,) * _s)

    in_specs = [
        const(p_f.shape),
        pl.BlockSpec((None, T_f + 4, C_f), lambda b, t: (b, 0, 0)),
        const(w1f.shape), const(b1f.shape), const(w2f.shape),
        const(p_s.shape),
        pl.BlockSpec((None, T_s + 4, C_s), lambda b, t: (b, 0, 0)),
        const(w1s.shape), const(b1s.shape), const(w2s.shape),
        const(b2.shape),
    ]
    # TODO(synk): for 2*F < 128 a fully lane-dense store would need padding the
    # output channels to 128 in-kernel and slicing in the wrapper.
    out_specs = pl.BlockSpec((None, tq, 2 * F), lambda b, t: (b, t, 0))

    # VMEM budget from the actual tile footprint (+ headroom), capped below
    # v7x physical VMEM.
    def nbytes(shape, dt):
        return int(np.prod(shape)) * jnp.dtype(dt).itemsize

    block_bytes = (
        nbytes(p_f.shape, cdt) + nbytes(p_s.shape, cdt)
        + nbytes((T_f + 4, C_f), cdt) + nbytes((T_s + 4, C_s), cdt)
        + nbytes(w1f.shape, cdt) + nbytes(w1s.shape, cdt)
        + nbytes(w2f.shape, cdt) + nbytes(w2s.shape, cdt)
        + nbytes(b1f.shape, jnp.float32) + nbytes(b1s.shape, jnp.float32)
        + nbytes(b2.shape, jnp.float32)
        + nbytes((tq, 2 * F), jnp.float32))
    interm_bytes = 4 * tq * (C_f + C_s + 2 * F) * 4
    vmem_limit = int(min(56 * 2**20,
                         max(2 * block_bytes + interm_bytes + 4 * 2**20,
                             8 * 2**20)))

    grid_spec = pltpu.PrefetchScalarGridSpec(
        num_scalar_prefetch=0,
        grid=(B, n_tiles),
        in_specs=in_specs,
        out_specs=out_specs,
    )

    return pl.pallas_call(
        kernel,
        out_shape=jax.ShapeDtypeStruct((B, T_out, 2 * F), jnp.float32),
        grid_spec=grid_spec,
        compiler_params=pltpu.CompilerParams(
            dimension_semantics=("parallel", "parallel"),
            vmem_limit_bytes=vmem_limit,
        ),
    )(p_f, xf, w1f, b1f, w2f, p_s, xs, w1s, b1s, w2s, b2)


# ----------------------------------------------------------------------------
# Synthetic init + pure-JAX reference (original op order, dense bicubic matrix).
# ----------------------------------------------------------------------------
def init_params(key, slow_dim, fast_dim, fusion_dim):
    ks = jax.random.split(key, 8)

    def kaiming(k, fan_in, fan_out):
        return jax.random.normal(k, (fan_in, fan_out), jnp.float32) * jnp.sqrt(2.0 / fan_in)

    def bias(k, fan_in, n):
        bound = 1.0 / jnp.sqrt(float(fan_in))
        return jax.random.uniform(k, (1, n), jnp.float32, -bound, bound)

    return dict(
        w1s=kaiming(ks[0], slow_dim, slow_dim), b1s=bias(ks[1], slow_dim, slow_dim),
        w2s=kaiming(ks[2], slow_dim, fusion_dim), b2s=bias(ks[3], slow_dim, fusion_dim),
        w1f=kaiming(ks[4], fast_dim, fast_dim), b1f=bias(ks[5], fast_dim, fast_dim),
        w2f=kaiming(ks[6], fast_dim, fusion_dim), b2f=bias(ks[7], fast_dim, fusion_dim),
    )


def reference_forward(slow_result, fast_result, params):
    B, T_s, _ = slow_result.shape
    _, T_f, _ = fast_result.shape
    u_s = jnp.asarray(_dense_upsample_matrix(T_s, 16))
    u_f = jnp.asarray(_dense_upsample_matrix(T_f, 4))
    with jax.default_matmul_precision("float32"):
        ys = jnp.einsum("oi,bic->boc", u_s, slow_result)
        yf = jnp.einsum("oi,bic->boc", u_f, fast_result)
        zs = jnp.maximum(ys @ params["w1s"] + params["b1s"], 0.0) @ params["w2s"] + params["b2s"]
        zf = jnp.maximum(yf @ params["w1f"] + params["b1f"], 0.0) @ params["w2f"] + params["b2f"]
    return jnp.concatenate([zf, zs], axis=2)


if __name__ == "__main__":
    key = jax.random.PRNGKey(0)
    k_param, k_slow, k_fast, k_frame = jax.random.split(key, 4)

    B = 2
    slow_feature_dim, fast_feature_dim, fusion_dim = 32, 16, 32
    T_slow, T_fast = 2, 8                    # -> T_out = 32 for both branches
    T_out = 4 * T_fast

    params = init_params(k_param, slow_feature_dim, fast_feature_dim, fusion_dim)
    slow_result = jax.random.normal(k_slow, (B, T_slow, slow_feature_dim), jnp.float32)
    fast_result = jax.random.normal(k_fast, (B, T_fast, fast_feature_dim), jnp.float32)
    frame_features = jax.random.normal(k_frame, (B, T_out, fusion_dim), jnp.float32)  # unused

    ref = reference_forward(slow_result, fast_result, params)

    # f32 compute path: tight check against PyTorch-semantics reference.
    out = jax.block_until_ready(
        upsampling_forward(frame_features, slow_result, fast_result, params,
                           compute_dtype=jnp.float32))
    assert out.shape == (B, T_out, 2 * fusion_dim), out.shape
    err = float(jnp.max(jnp.abs(out - ref)))
    assert jnp.allclose(out, ref, atol=2e-4, rtol=2e-4), err

    # bf16 MXU path (v6e/v7x fast path): f32 accumulation, looser tolerance.
    out_bf16 = jax.block_until_ready(
        upsampling_forward(frame_features, slow_result, fast_result, params,
                           compute_dtype=jnp.bfloat16))
    err_bf16 = float(jnp.max(jnp.abs(out_bf16 - ref)))
    assert jnp.allclose(out_bf16, ref, atol=1e-1, rtol=1e-1), err_bf16

    print("KERNEL_OK")
</pallas_src>

<mosaic_0001>
module attributes {stable_mosaic.version = 11 : i64} {
  func.func @kernel(%arg0: i32, %arg1: i32, %arg2: memref<32x12xf32, #tpu.memory_space<vmem>>, %arg3: memref<1x12x16xf32, #tpu.memory_space<vmem>>, %arg4: memref<16x16xf32, #tpu.memory_space<vmem>>, %arg5: memref<1x16xf32, #tpu.memory_space<vmem>>, %arg6: memref<16x64xf32, #tpu.memory_space<vmem>>, %arg7: memref<32x6xf32, #tpu.memory_space<vmem>>, %arg8: memref<1x6x32xf32, #tpu.memory_space<vmem>>, %arg9: memref<32x32xf32, #tpu.memory_space<vmem>>, %arg10: memref<1x32xf32, #tpu.memory_space<vmem>>, %arg11: memref<32x64xf32, #tpu.memory_space<vmem>>, %arg12: memref<1x64xf32, #tpu.memory_space<vmem>>, %arg13: memref<1x32x64xf32, #tpu.memory_space<vmem>>) attributes {dimension_semantics = [#tpu.dimension_semantics<parallel>, #tpu.dimension_semantics<parallel>], iteration_bounds = array<i64: 2, 1>, scalar_prefetch = 0 : i64, scratch_operands = 0 : i64, tpu.core_type = #tpu.core_type<tc>, window_params = [{pipeline_mode = #tpu.pipeline_mode<synchronous>, transform_indices = @transform_0, window_bounds = array<i64: 32, 12>}, {transform_indices = @transform_1, window_bounds = array<i64: 1, 12, 16>}, {pipeline_mode = #tpu.pipeline_mode<synchronous>, transform_indices = @transform_2, window_bounds = array<i64: 16, 16>}, {pipeline_mode = #tpu.pipeline_mode<synchronous>, transform_indices = @transform_3, window_bounds = array<i64: 1, 16>}, {pipeline_mode = #tpu.pipeline_mode<synchronous>, transform_indices = @transform_4, window_bounds = array<i64: 16, 64>}, {pipeline_mode = #tpu.pipeline_mode<synchronous>, transform_indices = @transform_5, window_bounds = array<i64: 32, 6>}, {transform_indices = @transform_6, window_bounds = array<i64: 1, 6, 32>}, {pipeline_mode = #tpu.pipeline_mode<synchronous>, transform_indices = @transform_7, window_bounds = array<i64: 32, 32>}, {pipeline_mode = #tpu.pipeline_mode<synchronous>, transform_indices = @transform_8, window_bounds = array<i64: 1, 32>}, {pipeline_mode = #tpu.pipeline_mode<synchronous>, transform_indices = @transform_9, window_bounds = array<i64: 32, 64>}, {pipeline_mode = #tpu.pipeline_mode<synchronous>, transform_indices = @transform_10, window_bounds = array<i64: 1, 64>}, {transform_indices = @transform_11, window_bounds = array<i64: 1, 32, 64>}]} {
    %c8_i32 = arith.constant 8 : i32
    %0 = arith.muli %arg1, %c8_i32 : i32
    %1 = tpu.assume_multiple %0, 8 : i32
    %c0 = arith.constant 0 : index
    %2 = arith.index_cast %1 : i32 to index
    %c0_0 = arith.constant 0 : index
    %3 = vector.load %arg3[%c0, %2, %c0_0] : memref<1x12x16xf32, #tpu.memory_space<vmem>>, vector<1x12x16xf32>
    %4 = vector.shape_cast %3 : vector<1x12x16xf32> to vector<12x16xf32>
    %c0_1 = arith.constant 0 : index
    %c0_2 = arith.constant 0 : index
    %5 = vector.load %arg4[%c0_1, %c0_2] : memref<16x16xf32, #tpu.memory_space<vmem>>, vector<16x16xf32>
    %cst = arith.constant dense<0.000000e+00> : vector<12x16xf32>
    %6 = tpu.matmul %4, %5, %cst {dimension_numbers = #tpu.dot_dimension_numbers<[1], [0], [0], [1], [0, 0, 1, 1], [], []>} : vector<12x16xf32>, vector<16x16xf32>, vector<12x16xf32> -> vector<12x16xf32>
    %c0_3 = arith.constant 0 : index
    %c0_4 = arith.constant 0 : index
    %7 = vector.load %arg2[%c0_3, %c0_4] : memref<32x12xf32, #tpu.memory_space<vmem>>, vector<32x12xf32>
    %cst_5 = arith.constant dense<0.000000e+00> : vector<32x16xf32>
    %8 = tpu.matmul %7, %6, %cst_5 {dimension_numbers = #tpu.dot_dimension_numbers<[1], [0], [0], [1], [0, 0, 1, 1], [], []>} : vector<32x12xf32>, vector<12x16xf32>, vector<32x16xf32> -> vector<32x16xf32>
    %c0_6 = arith.constant 0 : index
    %c0_7 = arith.constant 0 : index
    %9 = vector.load %arg5[%c0_6, %c0_7] : memref<1x16xf32, #tpu.memory_space<vmem>>, vector<1x16xf32>
    %10 = vector.broadcast %9 : vector<1x16xf32> to vector<32x16xf32>
    %11 = arith.addf %8, %10 : vector<32x16xf32>
    %cst_8 = arith.constant 0.000000e+00 : f32
    %12 = vector.broadcast %cst_8 : f32 to vector<32x16xf32>
    %13 = arith.maximumf %11, %12 : vector<32x16xf32>
    %c2_i32 = arith.constant 2 : i32
    %14 = arith.muli %arg1, %c2_i32 : i32
    %c0_9 = arith.constant 0 : index
    %15 = arith.index_cast %14 : i32 to index
    %c0_10 = arith.constant 0 : index
    %16 = vector.load %arg8[%c0_9, %15, %c0_10] : memref<1x6x32xf32, #tpu.memory_space<vmem>>, vector<1x6x32xf32>
    %17 = vector.shape_cast %16 : vector<1x6x32xf32> to vector<6x32xf32>
    %c0_11 = arith.constant 0 : index
    %c0_12 = arith.constant 0 : index
    %18 = vector.load %arg9[%c0_11, %c0_12] : memref<32x32xf32, #tpu.memory_space<vmem>>, vector<32x32xf32>
    %cst_13 = arith.constant dense<0.000000e+00> : vector<6x32xf32>
    %19 = tpu.matmul %17, %18, %cst_13 {dimension_numbers = #tpu.dot_dimension_numbers<[1], [0], [0], [1], [0, 0, 1, 1], [], []>} : vector<6x32xf32>, vector<32x32xf32>, vector<6x32xf32> -> vector<6x32xf32>
    %c0_14 = arith.constant 0 : index
    %c0_15 = arith.constant 0 : index
    %20 = vector.load %arg7[%c0_14, %c0_15] : memref<32x6xf32, #tpu.memory_space<vmem>>, vector<32x6xf32>
    %cst_16 = arith.constant dense<0.000000e+00> : vector<32x32xf32>
    %21 = tpu.matmul %20, %19, %cst_16 {dimension_numbers = #tpu.dot_dimension_numbers<[1], [0], [0], [1], [0, 0, 1, 1], [], []>} : vector<32x6xf32>, vector<6x32xf32>, vector<32x32xf32> -> vector<32x32xf32>
    %c0_17 = arith.constant 0 : index
    %c0_18 = arith.constant 0 : index
    %22 = vector.load %arg10[%c0_17, %c0_18] : memref<1x32xf32, #tpu.memory_space<vmem>>, vector<1x32xf32>
    %23 = vector.broadcast %22 : vector<1x32xf32> to vector<32x32xf32>
    %24 = arith.addf %21, %23 : vector<32x32xf32>
    %cst_19 = arith.constant 0.000000e+00 : f32
    %25 = vector.broadcast %cst_19 : f32 to vector<32x32xf32>
    %26 = arith.maximumf %24, %25 : vector<32x32xf32>
    %c0_20 = arith.constant 0 : index
    %c0_21 = arith.constant 0 : index
    %27 = vector.load %arg6[%c0_20, %c0_21] : memref<16x64xf32, #tpu.memory_space<vmem>>, vector<16x64xf32>
    %cst_22 = arith.constant dense<0.000000e+00> : vector<32x64xf32>
    %28 = tpu.matmul %13, %27, %cst_22 {dimension_numbers = #tpu.dot_dimension_numbers<[1], [0], [0], [1], [0, 0, 1, 1], [], []>} : vector<32x16xf32>, vector<16x64xf32>, vector<32x64xf32> -> vector<32x64xf32>
    %c0_23 = arith.constant 0 : index
    %c0_24 = arith.constant 0 : index
    %29 = vector.load %arg11[%c0_23, %c0_24] : memref<32x64xf32, #tpu.memory_space<vmem>>, vector<32x64xf32>
    %cst_25 = arith.constant dense<0.000000e+00> : vector<32x64xf32>
    %30 = tpu.matmul %26, %29, %cst_25 {dimension_numbers = #tpu.dot_dimension_numbers<[1], [0], [0], [1], [0, 0, 1, 1], [], []>} : vector<32x32xf32>, vector<32x64xf32>, vector<32x64xf32> -> vector<32x64xf32>
    %31 = arith.addf %28, %30 : vector<32x64xf32>
    %c0_26 = arith.constant 0 : index
    %c0_27 = arith.constant 0 : index
    %32 = vector.load %arg12[%c0_26, %c0_27] : memref<1x64xf32, #tpu.memory_space<vmem>>, vector<1x64xf32>
    %33 = vector.broadcast %32 : vector<1x64xf32> to vector<32x64xf32>
    %34 = arith.addf %31, %33 : vector<32x64xf32>
    %c0_28 = arith.constant 0 : index
    %c0_29 = arith.constant 0 : index
    %c0_30 = arith.constant 0 : index
    %35 = vector.load %arg13[%c0_28, %c0_29, %c0_30] : memref<1x32x64xf32, #tpu.memory_space<vmem>>, vector<1x32x64xf32>
    %36 = vector.shape_cast %35 : vector<1x32x64xf32> to vector<32x64xf32>
    %37 = vector.shape_cast %34 : vector<32x64xf32> to vector<1x32x64xf32>
    tpu.vector_store %arg13[%c0_28, %c0_29, %c0_30], %37 {strides = array<i32>} : memref<1x32x64xf32, #tpu.memory_space<vmem>>, vector<1x32x64xf32>,
    return
  }
  func.func @transform_0(%arg0: i32, %arg1: i32) -> (i32, i32) {
    %c0_i32 = arith.constant 0 : i32
    %c0_i32_0 = arith.constant 0 : i32
    %c0_i32_1 = arith.constant 0 : i32
    return %c0_i32, %c0_i32_0 : i32, i32
  }
  func.func @transform_1(%arg0: i32, %arg1: i32) -> (i32, i32, i32) {
    %c0_i32 = arith.constant 0 : i32
    %c0_i32_0 = arith.constant 0 : i32
    %c0_i32_1 = arith.constant 0 : i32
    return %arg0, %c0_i32, %c0_i32_0 : i32, i32, i32
  }
  func.func @transform_2(%arg0: i32, %arg1: i32) -> (i32, i32) {
    %c0_i32 = arith.constant 0 : i32
    %c0_i32_0 = arith.constant 0 : i32
    %c0_i32_1 = arith.constant 0 : i32
    return %c0_i32, %c0_i32_0 : i32, i32
  }
  func.func @transform_3(%arg0: i32, %arg1: i32) -> (i32, i32) {
    %c0_i32 = arith.constant 0 : i32
    %c0_i32_0 = arith.constant 0 : i32
    %c0_i32_1 = arith.constant 0 : i32
    return %c0_i32, %c0_i32_0 : i32, i32
  }
  func.func @transform_4(%arg0: i32, %arg1: i32) -> (i32, i32) {
    %c0_i32 = arith.constant 0 : i32
    %c0_i32_0 = arith.constant 0 : i32
    %c0_i32_1 = arith.constant 0 : i32
    return %c0_i32, %c0_i32_0 : i32, i32
  }
  func.func @transform_5(%arg0: i32, %arg1: i32) -> (i32, i32) {
    %c0_i32 = arith.constant 0 : i32
    %c0_i32_0 = arith.constant 0 : i32
    %c0_i32_1 = arith.constant 0 : i32
    return %c0_i32, %c0_i32_0 : i32, i32
  }
  func.func @transform_6(%arg0: i32, %arg1: i32) -> (i32, i32, i32) {
    %c0_i32 = arith.constant 0 : i32
    %c0_i32_0 = arith.constant 0 : i32
    %c0_i32_1 = arith.constant 0 : i32
    return %arg0, %c0_i32, %c0_i32_0 : i32, i32, i32
  }
  func.func @transform_7(%arg0: i32, %arg1: i32) -> (i32, i32) {
    %c0_i32 = arith.constant 0 : i32
    %c0_i32_0 = arith.constant 0 : i32
    %c0_i32_1 = arith.constant 0 : i32
    return %c0_i32, %c0_i32_0 : i32, i32
  }
  func.func @transform_8(%arg0: i32, %arg1: i32) -> (i32, i32) {
    %c0_i32 = arith.constant 0 : i32
    %c0_i32_0 = arith.constant 0 : i32
    %c0_i32_1 = arith.constant 0 : i32
    return %c0_i32, %c0_i32_0 : i32, i32
  }
  func.func @transform_9(%arg0: i32, %arg1: i32) -> (i32, i32) {
    %c0_i32 = arith.constant 0 : i32
    %c0_i32_0 = arith.constant 0 : i32
    %c0_i32_1 = arith.constant 0 : i32
    return %c0_i32, %c0_i32_0 : i32, i32
  }
  func.func @transform_10(%arg0: i32, %arg1: i32) -> (i32, i32) {
    %c0_i32 = arith.constant 0 : i32
    %c0_i32_0 = arith.constant 0 : i32
    %c0_i32_1 = arith.constant 0 : i32
    return %c0_i32, %c0_i32_0 : i32, i32
  }
  func.func @transform_11(%arg0: i32, %arg1: i32) -> (i32, i32, i32) {
    %c0_i32 = arith.constant 0 : i32
    %c0_i32_0 = arith.constant 0 : i32
    return %arg0, %arg1, %c0_i32 : i32, i32, i32
  }
}

</mosaic_0001>

<bundles_post_ra>
// kernel: tpu_custom_call.1
= control target key start
LH: loop header
LB: loop body
LE: loop exit
PB: predicated region body
PF: predicated region fallthrough
CT: control target
= control target key end

     0   :  { %s1729_s0 = inlined_call_operand.vmem [shape: f32[32,12], index: 0, kind: input, shape index: {}]   ;;  %s1730_s1 = inlined_call_operand.vmem [shape: f32[2,12,16], index: 1, kind: input, shape index: {}]   ;;  %s1731_s2 = inlined_call_operand.vmem [shape: f32[16,16], index: 2, kind: input, shape index: {}]   ;;  %s1732_s3 = inlined_call_operand.vmem [shape: f32[1,16], index: 3, kind: input, shape index: {}]   ;;  %s1733_s4 = inlined_call_operand.vmem [shape: f32[16,64], index: 4, kind: input, shape index: {}]   ;;  %s1734_s5 = inlined_call_operand.vmem [shape: f32[32,6], index: 5, kind: input, shape index: {}]   ;;  %s1735_s6 = inlined_call_operand.vmem [shape: f32[2,6,32], index: 6, kind: input, shape index: {}]   ;;  %s1736_s7 = inlined_call_operand.vmem [shape: f32[32,32], index: 7, kind: input, shape index: {}]   ;;  %s1737_s8 = inlined_call_operand.vmem [shape: f32[1,32], index: 8, kind: input, shape index: {}]   ;;  %s1738_s9 = inlined_call_operand.vmem [shape: f32[32,64], index: 9, kind: input, shape index: {}]   ;;  %s1739_s10 = inlined_call_operand.vmem [shape: f32[1,64], index: 10, kind: input, shape index: {}]   ;;  %s1740_s11 = inlined_call_operand.hbm [shape: f32[2,32,64], index: 11, kind: output, shape index: {}]  }
   0x1   :  { %1741 = sst [smem:[#allocation5_spill]] %s1729_s0 }
   0x2   :  { %1742 = sst [smem:[#allocation6_spill]] %s1730_s1 }
   0x3   :  { %16 = vsyncpa [#allocation3], 0 }
   0x4   :  { %18 = vsyncpa [#allocation3 + $0x1], 0  ;;  %s1515_s17 = smov 0   ;;  %s1517_s18 = smov 0  }
   0x5   :  { %s1519_s19 = smov 0   ;;  %s1521_s20 = smov 0  }
   0x6   :  { %s1523_s21 = smov 0   ;;  %s1525_s22 = smov 0  }
   0x7 LB: > { %s1141_s23 = sadd.s32 4294967295, %s1446_s22   ;;  %s1142_s24 = sadd.s32 4294967294, %s1446_s22   ;;  %s1446_s22 = sphi %s1525_s22, %s24_s22   ;;  %s1442_s21 = sphi %s1523_s21, %s1751_s21   ;;  %s1438_s20 = sphi %s1521_s20, %s1750_s20   ;;  %s1434_s19 = sphi %s1519_s19, %s1749_s19   ;;  %s1430_s18 = sphi %s1517_s18, %s1748_s18   ;;  %s1426_s17 = sphi %s1515_s17, %s1747_s17  }
   0x8   : > { %s36_s25 = sadd.s32 1, %s1442_s21  ;;  %s286_s26 = sadd.s32 1, %s1434_s19 }
   0x9   : > { %p38_p0 = scmp.ge.s32.totalorder %s36_s25, 2  ;;  %p296_p1 = scmp.ne.s32.totalorder %s1434_s19, %s1430_s18 }
   0xa   : > { %p297_p2 = scmp.eq.s32.totalorder %s1141_s23, 1  ;;  %p302_p3 = scmp.ne.s32.totalorder %s1430_s18, %s1426_s17 }
   0xb   : > { %s1753_s25 = smov (%p38_p0, %s36_s25), 0  ;;  %p303_p5 = scmp.eq.s32.totalorder %s1142_s24, 1 }
   0xc   : > { %p1555_p4 = por %p297_p2, %p296_p1  ;;  %s281_s28 = ssub.s32 %s1442_s21, %s1753_s25 }
   0xd   : > { %p1145_p6 = scmp.ge.s32.totalorder %s1446_s22, 1  ;;  %p284_p7 = scmp.eq.s32.totalorder %s281_s28, 0 }
   0xe   : > { %p1562_p8 = por %p303_p5, %p302_p3  ;;  %p363_p9 = scmp.lt.s32.totalorder %s1446_s22, 3 }
   0xf   : > { %s1568_s30 = scalar_select %p284_p7, %s1434_s19, %s286_s26  }
  0x10   : > { %p364_p10 = pnand %p1145_p6, %p363_p9 }
  0x11   : > { %v421_v0 = vld [vmem:[%s1731_s2] sm:$0xff] (!%p364_p10)  ;;  %v422_v1 = vld [vmem:[%s1731_s2 + $0x8] sm:$0xff] (!%p364_p10)  ;;  %p407_p11 = scmp.lt.s32.totalorder (!%p364_p10), %s1438_s20, 1  ;;  %vm423_vm0 = vcmask (!%p364_p10), 130048   ;;  %s1745_s1 = sld [smem:[#allocation6_spill]] (!%p364_p10)  ;;  %vm516_vm1 = vcmask (!%p364_p10), 97280  }
  0x12   : > { %367 = sbr.rel (%p364_p10) target bundleno = 932 (0x3a4), region = 64  ;;  %v1275_v2 = vpack.c.bf16 (!%p364_p10), %v422_v1, %v421_v0  ;;  %s1746_s0 = sld [smem:[#allocation5_spill]] (!%p364_p10)  ;;  %vm529_vm2 = vcmask (!%p364_p10), 1043456   ;;  %vm1448_vm3 = vmmov (!%p364_p10), 1   ;;  %v625_v9 = vld [vmem:[%s1736_s7] sm:$0xff] (!%p364_p10)  ;;  %v626_v10 = vld [vmem:[%s1736_s7 + $0x8] sm:$0xff] (!%p364_p10) }
  0x13   : > { %vm1280_vm4 = vmpackc.low (!%p364_p10), %vm529_vm2, %vm1448_vm3  ;;  %v1286_v12 = vpack.c.bf16 (!%p364_p10), %v626_v10, %v625_v9  ;;  %v1449_v13 = vmov (!%p364_p10), 0.0|0.0   ;;  %v627_v15 = vld [vmem:[%s1736_s7 + $0x10] sm:$0xff] (!%p364_p10)  ;;  %v628_v16 = vld [vmem:[%s1736_s7 + $0x18] sm:$0xff] (!%p364_p10)  ;;  %vm1450_vm5 = vmmov (!%p364_p10), 0   ;;  %v1451_v20 = vmov (!%p364_p10), 0.0  }
  0x14   : > { %1276 = vmatprep.subr.bf16.mxu0 (!%p364_p10), %v1275_v2  ;;  %v1289_v18 = vpack.c.bf16 (!%p364_p10), %v628_v16, %v627_v15  ;;  %vm629_vm6 = vcmask (!%p364_p10), 261120   ;;  %v703_v21 = vld [vmem:[%s1734_s5] sm:$0xff] (!%p364_p10)  ;;  %vm714_vm7 = vcmask (!%p364_p10), 48128   ;;  %v823_v23 = vld [vmem:[%s1738_s9 + $0x8] sm:$0xff] (!%p364_p10)  ;;  %vm727_vm8 = vcmask (!%p364_p10), 1045504   ;;  %v705_v32 = vld [vmem:[%s1734_s5 + $0x10] sm:$0xff] (!%p364_p10) }
  0x15   : > { %1278 = vmatpush3.bf16.msra.mxu0 (!%p364_p10), %v1275_v2  ;;  %v822_v22 = vld [vmem:[%s1738_s9] sm:$0xff] (!%p364_p10)  ;;  %v704_v30 = vld [vmem:[%s1734_s5 + $0x8] sm:$0xff] (!%p364_p10)  ;;  %v706_v33 = vld [vmem:[%s1734_s5 + $0x18] sm:$0xff] (!%p364_p10)  ;;  %vm1031_vm9 = vcmask (!%p364_p10), 523264  }
  0x16   : > { %v1291_v24 = vpack.c.bf16 (!%p364_p10), %v823_v23, %v822_v22  ;;  %v824_v34 = vld [vmem:[%s1738_s9 + $0x10] sm:$0xff] (!%p364_p10)  ;;  %v825_v35 = vld [vmem:[%s1738_s9 + $0x18] sm:$0xff] (!%p364_p10)  ;;  %v820_v37 = vld [vmem:[%s1733_s4] sm:$0xff] (!%p364_p10) }
  0x17   : > { %v1295_v36 = vpack.c.bf16 (!%p364_p10), %v825_v35, %v824_v34  ;;  %v821_v38 = vld [vmem:[%s1733_s4 + $0x8] sm:$0xff] (!%p364_p10)  ;;  %v1159_v40 = vld [vmem:[%s1737_s8] ss:$0 sm:$0xff] (!%p364_p10) }
  0x18   : > { %v505_v5 = vld [vmem:[%s1746_s0] sm:$0xff] (!%p364_p10)  ;;  %v506_v11 = vld [vmem:[%s1746_s0 + $0x8] sm:$0xff] (!%p364_p10)  ;;  %v507_v14 = vld [vmem:[%s1746_s0 + $0x10] sm:$0xff] (!%p364_p10)  ;;  %1292 = vmatprep.subr.bf16.mxu0 (!%p364_p10), %v1291_v24  ;;  %v1299_v39 = vpack.c.bf16 (!%p364_p10), %v821_v38, %v820_v37 }
  0x19   : > { %s1578_s16 = scalar_select %p407_p11, %s1438_s20, 1  ;;  %1226 = vmatprep.mubr.msk.f32.mxu1 %vm516_vm1, %v505_v5  ;;  %v508_v17 = vld [vmem:[%s1746_s0 + $0x18] sm:$0xff]  ;;  %v1152_v45 = vld [vmem:[%s1732_s3] ss:$0 sm:$0xff] }
  0x1a   : > { %v1173_v62 = vld [vmem:[%s1739_s10] ss:$0 sm:$0xff] }
  0x1b   : > { %s1179_s23 = sshll.u32 %s1578_s16, 4  ;;  %s1149_s24 = sshll.u32 %s1578_s16, 3 }
  0x1c   : > { %s411_s28 = scalar_lea.vmem %s1745_s1, %s1179_s23  ;;  %s415_s1 = scalar_lea.vmem %s1735_s6, %s1149_s24 }
  0x1d   : > { %v419_v3 = vld [vmem:[%s411_s28] sm:$0xff]  ;;  %v420_v4 = vld [vmem:[%s411_s28 + $0x8] sm:$0xf]  ;;  %s404_s24 = sand.u32 1, %s1430_s18   ;;  %s1180_s16 = sshll.u32 %s1438_s20, 9 }
  0x1e   : > { %1219 = vmatprep.mubr.msk.f32.mxu0 %vm423_vm0, %v419_v3  ;;  %v624_v19 = vld [vmem:[%s415_s1] sm:$0x3f]  ;;  %s1146_s26 = sshll.u32 %s404_s24, 5  ;;  %s1679_s23 = scalar_lea.hbm %s1740_s11, %s1180_s16 }
  0x1f   : > { %1220 = vmatmul.mubr.msk.f32.vlgmr.msra.gmra.mrb[0].mxu0 %vm423_vm0, %v420_v4  ;;  %s406_s13 = scalar_lea.vmem [#allocation2], %s1146_s26  ;;  %s1683_s20 = scalar_lea.sflag [#allocation3], %s404_s24 }
  0x20   : > { %1294 = vmatpush3.bf16.msra.mxu0 %v1291_v24  ;;  %s1052_s1 = sshll.u32 %s406_s13, 4  ;;  %s1452_s28 = smov [#allocation2]   ;;  %s1674_s1 = int_to_ptr.vmem [resolvable:$true] %s1052_s1 }
  0x21   : > { %1296 = vmatprep.subr.bf16.mxu0 %v1295_v36  ;;  %s1368_s26 = scalar_lea.vmem %s1674_s1, 512  ;;  %s1372_s12 = sshll.u32 %s1452_s28, 4  ;;  %s1373_s12 = int_to_ptr.vmem [resolvable:$false] %s1372_s12 }
  0x22   : > { %p1369_p12 = scmp.ne.s32.totalorder %s1674_s1, %s1368_s26  ;;  %s1374_s0 = scalar_lea.vmem %s1373_s12, 1024 }
  0x23   : > { %p1375_p1 = scmp.lt.s32.totalorder %s1674_s1, %s1373_s12  ;;  %p1376_p2 = scmp.lt.s32.totalorder %s1374_s0, %s1368_s26 }
  0x24   : > { %1298 = vmatpush3.bf16.msra.mxu0 %v1295_v36  ;;  %p1370_p13 = pnand %p1369_p12, %p1555_p4 }
  0x25   : > { %1300 = vmatprep.subr.bf16.mxu0 %v1299_v39  ;;  %p1377_p3 = por %p1376_p2, %p1375_p1 }
  0x26   : > { %p1371_p0 = pneg %p1370_p13 }
  0x28   : > { %p1378_p5 = pnand %p1377_p3, %p1371_p0 }
  0xf2   : > { %v1221_v6 = vpop.f32.mrb[0].mxu0 }
  0xf3   : > { %v496_v7 = vpop.f32.mrb[1].mxu0 }
  0xf4   : > { %v1279_v8 = vpack.c.bf16 %v1221_v6, %v496_v7 }
  0xf6   : > { %1281 = vmatprep.subr.msk.bf16.mxu1 %vm1280_vm4, %v1279_v8 }
  0xf7   : > { %1284 = vmatpush3.bf16.msk.msra.mxu1 %vm1280_vm4, %v1279_v8 }
  0xf8   : > { %1285 = vmatprep.subr.bf16.mxu1 %v1449_v13 }
  0xfa   : > { %1227 = vmatmul.mubr.msk.f32.vlgmr.msra.gmra.mrb[0].mxu1 %vm516_vm1, %v506_v11 }
  0xfb   : > { %1287 = vmatpush3.bf16.msra.mxu1 %v1286_v12  ;;  %1229 = vmatprep.mubr.msk.f32.mxu1 %vm516_vm1, %v507_v14 }
  0xfc   : > { %1288 = vmatprep.subr.bf16.mxu1 %v1449_v13 }
  0xfe   : > { %1230 = vmatmul.mubr.msk.f32.gmra.mrb[2].mxu1 %vm516_vm1, %v508_v17 }
  0xff   : > { %1290 = vmatpush3.bf16.msra.mxu1 %v1289_v18  ;;  %1240 = vmatprep.mubr.msk.f32.mxu1 %vm1450_vm5, %v1451_v20 }
 0x102   : > { %1241 = vmatmul.mubr.msk.f32.vlgmr.msra.gmra.mrb[4].mxu1 %vm629_vm6, %v624_v19 }
 0x103   : > { %1245 = vmatprep.mubr.msk.f32.mxu1 %vm714_vm7, %v703_v21 }
 0x1cd   : > { %v1228_v25 = vpop.f32.mrb[0].mxu1 }
 0x1ce   : > { %v599_v26 = vpop.f32.mrb[1].mxu1  ;;  %v605_v54 = vadd.f32 %v1228_v25, %v1152_v45 }
 0x1cf   : > { %v600_v51 = vadd.f32 %v1152_v45, %v599_v26 }
 0x1d0   : > { %v619_v58 = vmax.f32 %v605_v54, 0.0 }
 0x1d1   : > { %v1231_v27 = vpop.f32.mrb[2].mxu1  ;;  %v618_v56 = vmax.f32 %v600_v51, 0.0 }
 0x1d2   : > { %v609_v28 = vpop.f32.mrb[3].mxu1  ;;  %v615_v59 = vadd.f32 %v1231_v27, %v1152_v45 }
 0x1d3   : > { %v610_v57 = vadd.f32 %v1152_v45, %v609_v28 }
 0x1d4   : > { %v621_v61 = vmax.f32 %v615_v59, 0.0 }
 0x1d5   : > { %v699_v29 = vpop.f32.mrb[4].mxu1  ;;  %v620_v60 = vmax.f32 %v610_v57, 0.0 }
 0x1d6   : > { %v1242_v31 = vpop.f32.mrb[5].mxu1  ;;  %1243 = vmatprep.subr.msk.mxu1 %vm727_vm8, %v699_v29 }
 0x1d7   : > { %1244 = vmatpush3.msk.msra.mxu1 %vm727_vm8, %v699_v29 }
 0x1d8   : > { %1246 = vmatmul.mubr.msk.f32.vlgmr.msra.gmra.mrb[6].mxu1 %vm714_vm7, %v704_v30 }
 0x1d9   : > { %1248 = vmatprep.mubr.msk.f32.mxu1 %vm714_vm7, %v705_v32 }
 0x1dc   : > { %1249 = vmatmul.mubr.msk.f32.gmra.mrb[8].mxu1 %vm714_vm7, %v706_v33 }
 0x2ab   : > { %v1247_v41 = vpop.f32.mrb[6].mxu1 }
 0x2ac   : > { %v803_v42 = vadd.f32 %v1247_v41, %v1159_v40  ;;  %v797_v43 = vpop.f32.mrb[7].mxu1 }
 0x2ad   : > { %v798_v44 = vadd.f32 %v1159_v40, %v797_v43 }
 0x2ae   : > { %v817_v48 = vmax.f32 %v803_v42, 0.0 }
 0x2af   : > { %v816_v46 = vmax.f32 %v798_v44, 0.0  ;;  %v1250_v47 = vpop.f32.mrb[8].mxu1 }
 0x2b0   : > { %v813_v49 = vadd.f32 %v1250_v47, %v1159_v40  ;;  %v807_v50 = vpop.f32.mrb[9].mxu1 }
 0x2b1   : > { %v808_v52 = vadd.f32 %v1159_v40, %v807_v50  ;;  %1259 = vmatprep.mubr.msk.f32.mxu0 %vm629_vm6, %v816_v46 }
 0x2b2   : > { %1260 = vmatmul.mubr.msk.f32.vlgmr.msra.gmra.mrb[2].mxu0 %vm629_vm6, %v817_v48  ;;  %v819_v55 = vmax.f32 %v813_v49, 0.0 }
 0x2b3   : > { %v818_v53 = vmax.f32 %v808_v52, 0.0  ;;  %1302 = vmatpush3.bf16.msra.mxu0 %v1299_v39 }
 0x2b5   : > { %1262 = vmatprep.mubr.msk.f32.mxu0 %vm629_vm6, %v818_v53 }
 0x2b6   : > { %1263 = vmatmul.mubr.msk.f32.gmra.mrb[4].mxu0 %vm629_vm6, %v819_v55 }
 0x2b7   : > { %1269 = vmatprep.mubr.msk.f32.mxu0 %vm423_vm0, %v618_v56 }
 0x2ba   : > { %1270 = vmatmul.mubr.msk.f32.vlgmr.msra.gmra.mrb[2].mxu0 %vm423_vm0, %v619_v58 }
 0x2bb   : > { %1272 = vmatprep.mubr.msk.f32.mxu0 %vm423_vm0, %v620_v60 }
 0x2be   : > { %1273 = vmatmul.mubr.msk.f32.gmra.mrb[4].mxu0 %vm423_vm0, %v621_v61 }
 0x38d   : > { %v1271_v63 = vpop.f32.mrb[2].mxu0 }
 0x38e   : > { %v1028_v0 = vadd.f32 %v1271_v63, %v1173_v62  ;;  %v1001_v1 = vpop.f32.mrb[3].mxu0 }
 0x38f   : > { %v1027_v2 = vadd.f32 %v1173_v62, %v1001_v1 }
 0x390   : > { %1033 = vst.msk [vmem:[%s406_s13 + $0x8] sm:$0xff] %vm1031_vm9, %v1028_v0 }
 0x391   : > { %1032 = vst.msk [vmem:[%s406_s13] sm:$0xff] %vm1031_vm9, %v1027_v2  ;;  %v1274_v3 = vpop.f32.mrb[4].mxu0 }
 0x392   : > { %v1030_v4 = vadd.f32 %v1274_v3, %v1173_v62  ;;  %v1011_v5 = vpop.f32.mrb[5].mxu0 }
 0x393   : > { %v1029_v6 = vadd.f32 %v1173_v62, %v1011_v5 }
 0x394   : > { %1035 = vst.msk [vmem:[%s406_s13 + $0x18] sm:$0xff] %vm1031_vm9, %v1030_v4 }
 0x395   : > { %1034 = vst.msk [vmem:[%s406_s13 + $0x10] sm:$0xff] %vm1031_vm9, %v1029_v6 }
 0x396   : > { %1381 = shalt.err (!%p1378_p5)
}
 0x397   : > { %s1382_s24 = scalar_lea.hbm %s1679_s23, 512  ;;  %s1386_s14 = scalar_lea.hbm %s1740_s11, 1024 }
 0x398   : > { %p1383_p6 = scmp.ne.s32.totalorder %s1679_s23, %s1382_s24  ;;  %p1387_p10 = scmp.lt.u32.totalorder %s1679_s23, %s1740_s11 }
 0x399   : > { %p1388_p11 = scmp.lt.u32.totalorder %s1386_s14, %s1382_s24  ;;  %p1390_p13 = scmp.lt.u32.totalorder %s1382_s24, %s1679_s23 }
 0x39a   : > { %p1384_p7 = pnand %p1383_p6, %p1555_p4 }
 0x39b   : > { %p1389_p12 = por %p1388_p11, %p1387_p10 }
 0x39c   : > { %p1385_p9 = pneg %p1384_p7 }
 0x39d   : > { %p1391_p0 = por %p1390_p13, %p1389_p12 }
 0x39f   : > { %p1392_p1 = pnand %p1391_p0, %p1385_p9 }
 0x3a1   : > { %1395 = shalt.err (!%p1392_p1)
}
 0x3a2   : > { %s1453_s0 = smov 128   ;;  %s1454_s26 = smov 8  }
 0x3a3   : > { %1307 = dma.vmem_to_hbm [thread:$0]  (%p1555_p4), %s1674_s1, 512, %s1679_s23, %s1683_s20, %s1453_s0, %s1453_s0, %s1454_s26  }
 0x3a4 PF: > { %p1313_p2 = scmp.ge.s32.totalorder %s1446_s22, 2  ;;  %s1067_s12 = sand.u32 1, %s1426_s17  }
 0x3a5   : > { %s1068_s24 = scalar_lea.sflag [#allocation3], %s1067_s12 }
 0x3a6   : > { %p1310_p3 = pnand %p1313_p2, %p1562_p8 }
 0x3a8   : > { %1421 = dma.done.wait (!%p1310_p3), %s1068_s24, 512  }
 0x3a9   : > { %1423 = vsyncadd (!%p1310_p3), %s1068_s24, 4294966784  ;;  %s24_s22 = sadd.s32 1, %s1446_s22   ;;  %s1747_s17 = smov %s1430_s18 }
 0x3aa   : > { %p21_p5 = scmp.ge.s32.totalorder %s24_s22, 4   ;;  %s1748_s18 = smov %s1434_s19 }
 0x3ab   : > { %s1749_s19 = smov %s1568_s30  ;;  %s1750_s20 = smov %s1442_s21 }
 0x3ac   : > { %s1751_s21 = smov %s1753_s25  ;;  %23 = sbr.rel (!%p21_p5) target bundleno = 7 (0x7), region = 104 }
 0x3b3   :  { %1073 = vsyncpa [#allocation3], 1 }
 0x3b4   :  { %1075 = vsyncpa [#allocation3 + $0x1], 1 }

</bundles_post_ra>
